<compile_context>
chip_gen: v7x
topology: tpu7x:2x2x1
jax: 0.10.0
libtpu: 0.0.40
codegen_flags: <defaults>
</compile_context>

<pallas_src>
import jax
import jax.numpy as jnp
from jax.experimental import pallas as pl
from jax.experimental.pallas import tpu as pltpu

EPS = 1e-5


def _round_up(n, m):
    return ((n + m - 1) // m) * m


def _device_kind():
    try:
        return jax.devices()[0].device_kind.lower()
    except Exception:
        return ""


def _is_v7x():
    return "v7" in _device_kind()


def _vmem_budget_bytes():
    """Generation-aware scoped-VMEM budget (conservative headroom included)."""
    if _is_v7x():
        # 64 MiB physical per TensorCore on v7x -> stay well under it.
        return 48 * 1024 * 1024
    # v5e / v6e: 128 MiB physical VMEM; leave room for co-resident XLA scratch.
    return 80 * 1024 * 1024


def _choose_tile_rows(rows, H, itemsize):
    """Pick the biggest row tile whose VMEM footprint (double-buffered in/out
    tiles + f32 intermediates) fits the budget, aligned to the dtype's sublane
    packing.  If everything fits in one tile, keep a single block on v5e/v6e
    and split into >= ~4 steps on v7x so both TensorCores get pipelined work.
    """
    sublane = {4: 8, 2: 16, 1: 32}.get(itemsize, 8)

    # Per row of tile: 2 pipeline buffers x (input + output) tiles, plus ~3
    # f32 temps (xf, centered, y) live in the body.
    per_row = 4 * H * itemsize + 3 * H * 4
    budget = int(_vmem_budget_bytes() * 0.6)
    tile = max(sublane, (budget // max(per_row, 1)) // sublane * sublane)

    if rows <= tile:
        if _is_v7x() and rows >= 4 * sublane:
            # Target >= 4 grid steps -> >= 2 per TensorCore so each core can
            # double-buffer its DMAs.
            return _round_up(pl.cdiv(rows, 4), sublane)
        # Single block covering all rows (full-dim block is always legal).
        return rows
    return tile


def _build_kernel(has_bias):
    """LayerNorm kernel; the block's last dim is exactly H, so plain
    reductions over axis -1 are correct (no lane masking needed)."""

    def body(x, w, b, out_dtype):
        xf = x.astype(jnp.float32)
        mean = jnp.mean(xf, axis=-1, keepdims=True)
        centered = xf - mean
        var = jnp.mean(centered * centered, axis=-1, keepdims=True)
        y = centered * jax.lax.rsqrt(var + EPS)
        y = y * w.astype(jnp.float32)
        if b is not None:
            y = y + b.astype(jnp.float32)
        return y.astype(out_dtype)

    if has_bias:
        def kernel(x_ref, w_ref, b_ref, o_ref):
            o_ref[...] = body(x_ref[...], w_ref[...], b_ref[...], o_ref.dtype)
    else:
        def kernel(x_ref, w_ref, o_ref):
            o_ref[...] = body(x_ref[...], w_ref[...], None, o_ref.dtype)
    return kernel


def layer_norm(x, weight, bias=None):
    """LayerNorm over the last dim of x. weight: (H,), bias: (H,) or None."""
    orig_shape = x.shape
    H = int(orig_shape[-1])
    assert weight.shape == (H,)
    has_bias = bias is not None

    rows = 1
    for d in orig_shape[:-1]:
        rows *= int(d)
    x2d = x.reshape(rows, H)

    itemsize = jnp.dtype(x.dtype).itemsize
    tile_rows = _choose_tile_rows(rows, H, itemsize)
    grid = (pl.cdiv(rows, tile_rows),)

    args = [x2d, weight.reshape(1, H)]
    in_specs = [
        pl.BlockSpec((tile_rows, H), lambda i: (i, 0)),
        pl.BlockSpec((1, H), lambda i: (0, 0)),
    ]
    if has_bias:
        args.append(bias.reshape(1, H))
        in_specs.append(pl.BlockSpec((1, H), lambda i: (0, 0)))

    kernel = _build_kernel(has_bias)

    out = pl.pallas_call(
        kernel,
        out_shape=jax.ShapeDtypeStruct((rows, H), x.dtype),
        grid_spec=pltpu.PrefetchScalarGridSpec(
            num_scalar_prefetch=0,
            grid=grid,
            in_specs=in_specs,
            out_specs=pl.BlockSpec((tile_rows, H), lambda i: (i, 0)),
        ),
        compiler_params=pltpu.CompilerParams(
            dimension_semantics=("parallel",),
            vmem_limit_bytes=_vmem_budget_bytes(),
        ),
    )(*args)

    return out.reshape(orig_shape)


def _reference(x, weight, bias=None):
    mean = jnp.mean(x, axis=-1, keepdims=True)
    var = jnp.mean((x - mean) ** 2, axis=-1, keepdims=True)
    y = (x - mean) / jnp.sqrt(var + EPS) * weight
    if bias is not None:
        y = y + bias
    return y


if __name__ == "__main__":
    key = jax.random.PRNGKey(0)
    batch, seq, hidden = 2, 8, 32

    x = jax.random.normal(key, (batch, seq, hidden), dtype=jnp.float32)

    # Matches nn.Parameter(torch.ones(ndim)) / torch.zeros(ndim) init.
    weight = jnp.ones((hidden,), dtype=jnp.float32)
    bias = jnp.zeros((hidden,), dtype=jnp.float32)

    # With bias (bias=True path).
    y = jax.block_until_ready(layer_norm(x, weight, bias))
    ref = _reference(x, weight, bias)
    assert jnp.allclose(y, ref, atol=1e-5, rtol=1e-5), "mismatch vs reference (bias)"

    # Without bias (bias=False path): no bias stream, no add.
    y_nb = jax.block_until_ready(layer_norm(x, weight, None))
    ref_nb = _reference(x, weight, None)
    assert jnp.allclose(y_nb, ref_nb, atol=1e-5, rtol=1e-5), "mismatch vs reference (no bias)"

    print("KERNEL_OK")
</pallas_src>

<mosaic_0001>
module attributes {stable_mosaic.version = 11 : i64} {
  func.func @kernel(%arg0: i32, %arg1: memref<16x32xf32, #tpu.memory_space<vmem>>, %arg2: memref<1x32xf32, #tpu.memory_space<vmem>>, %arg3: memref<1x32xf32, #tpu.memory_space<vmem>>, %arg4: memref<16x32xf32, #tpu.memory_space<vmem>>) attributes {dimension_semantics = [#tpu.dimension_semantics<parallel>], iteration_bounds = array<i64: 1>, scalar_prefetch = 0 : i64, scratch_operands = 0 : i64, tpu.core_type = #tpu.core_type<tc>, window_params = [{transform_indices = @transform_0, window_bounds = array<i64: 16, 32>}, {pipeline_mode = #tpu.pipeline_mode<synchronous>, transform_indices = @transform_1, window_bounds = array<i64: 1, 32>}, {pipeline_mode = #tpu.pipeline_mode<synchronous>, transform_indices = @transform_2, window_bounds = array<i64: 1, 32>}, {transform_indices = @transform_3, window_bounds = array<i64: 16, 32>}]} {
    %c0 = arith.constant 0 : index
    %c0_0 = arith.constant 0 : index
    %0 = vector.load %arg1[%c0, %c0_0] : memref<16x32xf32, #tpu.memory_space<vmem>>, vector<16x32xf32>
    %c0_1 = arith.constant 0 : index
    %c0_2 = arith.constant 0 : index
    %1 = vector.load %arg2[%c0_1, %c0_2] : memref<1x32xf32, #tpu.memory_space<vmem>>, vector<1x32xf32>
    %c0_3 = arith.constant 0 : index
    %c0_4 = arith.constant 0 : index
    %2 = vector.load %arg3[%c0_3, %c0_4] : memref<1x32xf32, #tpu.memory_space<vmem>>, vector<1x32xf32>
    %cst = arith.constant dense<0.000000e+00> : vector<16xf32>
    %3 = vector.multi_reduction <add>, %0, %cst [1] : vector<16x32xf32> to vector<16xf32>
    %4 = vector.shape_cast %3 : vector<16xf32> to vector<16x1xf32>
    %cst_5 = arith.constant 3.200000e+01 : f32
    %5 = vector.broadcast %cst_5 : f32 to vector<16x1xf32>
    %6 = arith.divf %4, %5 : vector<16x1xf32>
    %7 = vector.broadcast %6 : vector<16x1xf32> to vector<16x32xf32>
    %8 = arith.subf %0, %7 : vector<16x32xf32>
    %9 = arith.mulf %8, %8 : vector<16x32xf32>
    %cst_6 = arith.constant dense<0.000000e+00> : vector<16xf32>
    %10 = vector.multi_reduction <add>, %9, %cst_6 [1] : vector<16x32xf32> to vector<16xf32>
    %11 = vector.shape_cast %10 : vector<16xf32> to vector<16x1xf32>
    %cst_7 = arith.constant 3.200000e+01 : f32
    %12 = vector.broadcast %cst_7 : f32 to vector<16x1xf32>
    %13 = arith.divf %11, %12 : vector<16x1xf32>
    %cst_8 = arith.constant 9.99999974E-6 : f32
    %14 = vector.broadcast %cst_8 : f32 to vector<16x1xf32>
    %15 = arith.addf %13, %14 : vector<16x1xf32>
    %16 = math.rsqrt %15 : vector<16x1xf32>
    %17 = vector.broadcast %16 : vector<16x1xf32> to vector<16x32xf32>
    %18 = arith.mulf %8, %17 : vector<16x32xf32>
    %19 = vector.broadcast %1 : vector<1x32xf32> to vector<16x32xf32>
    %20 = arith.mulf %18, %19 : vector<16x32xf32>
    %21 = vector.broadcast %2 : vector<1x32xf32> to vector<16x32xf32>
    %22 = arith.addf %20, %21 : vector<16x32xf32>
    %c0_9 = arith.constant 0 : index
    %c0_10 = arith.constant 0 : index
    %23 = vector.load %arg4[%c0_9, %c0_10] : memref<16x32xf32, #tpu.memory_space<vmem>>, vector<16x32xf32>
    tpu.vector_store %arg4[%c0_9, %c0_10], %22 {strides = array<i32>} : memref<16x32xf32, #tpu.memory_space<vmem>>, vector<16x32xf32>,
    return
  }
  func.func @transform_0(%arg0: i32) -> (i32, i32) {
    %c0_i32 = arith.constant 0 : i32
    %c0_i32_0 = arith.constant 0 : i32
    return %arg0, %c0_i32 : i32, i32
  }
  func.func @transform_1(%arg0: i32) -> (i32, i32) {
    %c0_i32 = arith.constant 0 : i32
    %c0_i32_0 = arith.constant 0 : i32
    %c0_i32_1 = arith.constant 0 : i32
    return %c0_i32, %c0_i32_0 : i32, i32
  }
  func.func @transform_2(%arg0: i32) -> (i32, i32) {
    %c0_i32 = arith.constant 0 : i32
    %c0_i32_0 = arith.constant 0 : i32
    %c0_i32_1 = arith.constant 0 : i32
    return %c0_i32, %c0_i32_0 : i32, i32
  }
  func.func @transform_3(%arg0: i32) -> (i32, i32) {
    %c0_i32 = arith.constant 0 : i32
    %c0_i32_0 = arith.constant 0 : i32
    return %arg0, %c0_i32 : i32, i32
  }
}

</mosaic_0001>

<bundles_post_ra>
// kernel: tpu_custom_call.1
= control target key start
LH: loop header
LB: loop body
LE: loop exit
PB: predicated region body
PF: predicated region fallthrough
CT: control target
= control target key end

     0   :  { %8 = vsyncpa [#allocation3], 0  ;;  %s319_s0 = inlined_call_operand.hbm [shape: f32[16,32], index: 0, kind: input, shape index: {}]   ;;  %s320_s1 = inlined_call_operand.hbm [shape: f32[1,32], index: 1, kind: input, shape index: {}]   ;;  %s321_s2 = inlined_call_operand.hbm [shape: f32[1,32], index: 2, kind: input, shape index: {}]   ;;  %s322_s3 = inlined_call_operand.hbm [shape: f32[16,32], index: 3, kind: output, shape index: {}]  }
   0x1   :  { %9 = vsyncpa [#allocation6], 0 }
   0x2   :  { %10 = vsyncpa [#allocation4], 0  ;;  %s226_s12 = smov [#allocation5]   ;;  %s227_s14 = smov [#allocation2]  }
   0x3   :  { %s29_s13 = sshll.u32 %s226_s12, 4  ;;  %s16_s15 = sshll.u32 %s227_s14, 4  ;;  %s30_s13 = int_to_ptr.vmem [resolvable:$true] %s29_s13  ;;  %s252_s15 = int_to_ptr.vmem [resolvable:$true] %s16_s15 }
   0x4   :  { %s132_s18 = scalar_lea.hbm %s320_s1, 16 }
   0x5   :  { %p133_p0 = scmp.ne.s32.totalorder %s320_s1, %s132_s18  ;;  %p136_p1 = scmp.lt.u32.totalorder %s132_s18, %s320_s1 }
   0x7   :  { %p138_p2 = pnand %p136_p1, %p133_p0 }
   0x9   :  { %141 = shalt.err (!%p138_p2)
}
   0xa   :  { %s142_s23 = scalar_lea.vmem %s30_s13, 16  ;;  %s146_s24 = scalar_lea.vmem %s30_s13, 32 }
   0xb   :  { %p143_p3 = scmp.ne.s32.totalorder %s30_s13, %s142_s23  ;;  %p147_p4 = scmp.lt.s32.totalorder %s30_s13, %s30_s13 }
   0xc   :  { %p148_p5 = scmp.lt.s32.totalorder %s146_s24, %s142_s23 }
   0xe   :  { %p149_p6 = por %p148_p5, %p147_p4 }
  0x10   :  { %p150_p7 = pnand %p149_p6, %p143_p3 }
  0x12   :  { %153 = shalt.err (!%p150_p7)
}
  0x13   :  { %32 = dma.hbm_to_vmem [thread:$0]  %s320_s1, 16, %s30_s13, [#allocation6]  }
  0x14   :  { %s154_s29 = scalar_lea.hbm %s319_s0, 256 }
  0x15   :  { %p155_p8 = scmp.ne.s32.totalorder %s319_s0, %s154_s29  ;;  %p158_p9 = scmp.lt.u32.totalorder %s154_s29, %s319_s0 }
  0x17   :  { %p160_p10 = pnand %p158_p9, %p155_p8 }
  0x19   :  { %163 = shalt.err (!%p160_p10)
}
  0x1a   :  { %s164_s7 = scalar_lea.vmem %s252_s15, 256  ;;  %p169_p12 = scmp.lt.s32.totalorder %s252_s15, %s252_s15 }
  0x1b   :  { %p165_p11 = scmp.ne.s32.totalorder %s252_s15, %s164_s7  ;;  %p170_p13 = scmp.lt.s32.totalorder %s164_s7, %s164_s7 }
  0x1d   :  { %p171_p0 = por %p170_p13, %p169_p12 }
  0x1f   :  { %p172_p1 = pnand %p171_p0, %p165_p11 }
  0x21   :  { %175 = shalt.err (!%p172_p1)
}
  0x22   :  { %s228_s1 = smov 128   ;;  %s229_s8 = smov 8  }
  0x23   :  { %22 = dma.hbm_to_vmem [thread:$0]  %s319_s0, 256, %s252_s15, [#allocation3], %s228_s1, %s228_s1, %s229_s8  }
  0x24   :  { %s230_s11 = smov [#allocation7]   ;;  %s176_s16 = scalar_lea.hbm %s321_s2, 16 }
  0x25   :  { %s39_s12 = sshll.u32 %s230_s11, 4  ;;  %p177_p2 = scmp.ne.s32.totalorder %s321_s2, %s176_s16  ;;  %s40_s12 = int_to_ptr.vmem [resolvable:$true] %s39_s12 }
  0x26   :  { %p180_p3 = scmp.lt.u32.totalorder %s176_s16, %s321_s2 }
  0x28   :  { %p182_p4 = pnand %p180_p3, %p177_p2 }
  0x2a   :  { %185 = shalt.err (!%p182_p4)
}
  0x2b   :  { %s186_s21 = scalar_lea.vmem %s40_s12, 16  ;;  %s190_s0 = scalar_lea.vmem %s40_s12, 32 }
  0x2c   :  { %p187_p5 = scmp.ne.s32.totalorder %s40_s12, %s186_s21  ;;  %p191_p6 = scmp.lt.s32.totalorder %s40_s12, %s40_s12 }
  0x2d   :  { %p192_p7 = scmp.lt.s32.totalorder %s190_s0, %s186_s21 }
  0x2f   :  { %p193_p8 = por %p192_p7, %p191_p6 }
  0x31   :  { %p194_p9 = pnand %p193_p8, %p187_p5 }
  0x33   :  { %197 = shalt.err (!%p194_p9)
}
  0x34   :  { %42 = dma.hbm_to_vmem [thread:$0]  %s321_s2, 16, %s40_s12, [#allocation6]  }
  0x35   :  { %220 = dma.done.wait [#allocation3], 256  }
  0x36   :  { %221 = vsyncadd [#allocation3], 4294967040 }
  0x37   :  { %222 = dma.done.wait [#allocation6], 32  }
  0x38   :  { %223 = vsyncadd [#allocation6], 4294967264  ;;  %vm56_vm0 = vcmask 261120   ;;  %v52_v0 = vld [vmem:[#allocation2] sm:$0xff]  ;;  %v53_v1 = vld [vmem:[#allocation2 + $0x8] sm:$0xff]  ;;  %s231_s2 = smov [#allocation8]  }
  0x39   :  { %v57_v2 = vsel %vm56_vm0, %v52_v0, 0.0  ;;  %v60_v3 = vsel %vm56_vm0, %v53_v1, 0.0  ;;  %v120_v21 = vld [vmem:[#allocation5] ss:$0 sm:$0xff]  ;;  %v121_v23 = vld [vmem:[#allocation7] ss:$0 sm:$0xff] }
  0x3a   :  { %58 = vadd.xlane.f32.xlu0 %v57_v2  ;;  %s107_s23 = sshll.u32 %s231_s2, 4  ;;  %s108_s23 = int_to_ptr.vmem [resolvable:$true] %s107_s23 }
  0x3b   :  { %s198_s24 = scalar_lea.vmem %s108_s23, 256  ;;  %p203_p11 = scmp.lt.s32.totalorder %s108_s23, %s108_s23 }
  0x3c   :  { %p199_p10 = scmp.ne.s32.totalorder %s108_s23, %s198_s24  ;;  %p204_p12 = scmp.lt.s32.totalorder %s198_s24, %s198_s24 }
  0x3e   :  { %61 = vadd.xlane.f32.xlu0 %v60_v3  ;;  %p205_p13 = por %p204_p12, %p203_p11 }
  0x40   :  { %p206_p0 = pnand %p205_p13, %p199_p10 }
  0xc7   :  { %v59_v4 = vpop.xlane.xlu0 %58 }
  0xc8   :  { %v64_v5 = vmul.f32 0.03125, %v59_v4 }
  0xca   :  { %v66_v6 = vsub.f32 %v52_v0, %v64_v5 }
  0xcb   :  { %v62_v7 = vpop.xlane.xlu0 %61 }
  0xcc   :  { %v65_v8 = vmul.f32 0.03125, %v62_v7  ;;  %v68_v9 = vmul.f32 %v66_v6, %v66_v6 }
  0xce   :  { %v67_v10 = vsub.f32 %v53_v1, %v65_v8  ;;  %v70_v11 = vsel %vm56_vm0, %v68_v9, 0.0 }
  0xcf   :  { %71 = vadd.xlane.f32.xlu1 %v70_v11 }
  0xd0   :  { %v69_v12 = vmul.f32 %v67_v10, %v67_v10 }
  0xd2   :  { %v73_v13 = vsel %vm56_vm0, %v69_v12, 0.0 }
  0xd3   :  { %74 = vadd.xlane.f32.xlu1 %v73_v13 }
 0x15c   :  { %v72_v14 = vpop.xlane.xlu1 %71 }
 0x15d   :  { %v76_v15 = vmul.f32 0.03125, %v72_v14 }
 0x15f   :  { %v78_v16 = vadd.f32 1e-05, %v76_v15 }
 0x160   :  { %v75_v17 = vpop.xlane.xlu1 %74 }
 0x161   :  { %128 = vrsqrt.f32 %v78_v16  ;;  %v77_v18 = vmul.f32 0.03125, %v75_v17 }
 0x163   :  { %v79_v19 = vadd.f32 1e-05, %v77_v18 }
 0x165   :  { %130 = vrsqrt.f32 %v79_v19 }
 0x16b   :  { %v129_v20 = vpop.eup %128 }
 0x16c   :  { %v82_v22 = vmul.f32 %v129_v20, %v66_v6 }
 0x16e   :  { %v90_v24 = vmul.f32 %v120_v21, %v82_v22 }
 0x16f   :  { %v131_v25 = vpop.eup %130 }
 0x170   :  { %v83_v26 = vmul.f32 %v131_v25, %v67_v10  ;;  %v98_v27 = vadd.f32 %v121_v23, %v90_v24 }
 0x172   :  { %v91_v28 = vmul.f32 %v120_v21, %v83_v26  ;;  %100 = vst.msk [vmem:[#allocation8] sm:$0xff] %vm56_vm0, %v98_v27 }
 0x174   :  { %v99_v29 = vadd.f32 %v121_v23, %v91_v28 }
 0x176   :  { %101 = vst.msk [vmem:[#allocation8 + $0x8] sm:$0xff] %vm56_vm0, %v99_v29 }
 0x177   :  { %209 = shalt.err (!%p206_p0)
}
 0x178   :  { %s210_s27 = scalar_lea.hbm %s322_s3, 256 }
 0x179   :  { %p211_p1 = scmp.ne.s32.totalorder %s322_s3, %s210_s27  ;;  %p214_p2 = scmp.lt.u32.totalorder %s210_s27, %s322_s3 }
 0x17b   :  { %p216_p3 = pnand %p214_p2, %p211_p1 }
 0x17d   :  { %219 = shalt.err (!%p216_p3)
}
 0x17e   :  { %113 = dma.vmem_to_hbm [thread:$0]  %s108_s23, 256, %s322_s3, [#allocation4], %s228_s1, %s228_s1, %s229_s8  }
 0x17f   :  { %224 = dma.done.wait [#allocation4], 256  }
 0x180   :  { %225 = vsyncadd [#allocation4], 4294967040 }
 0x181   :  { %117 = vsyncpa [#allocation3], 1 }
 0x182   :  { %118 = vsyncpa [#allocation6], 1 }
 0x183   :  { %119 = vsyncpa [#allocation4], 1 }

</bundles_post_ra>
